<compile_context>
chip_gen: v7x
topology: tpu7x:2x2x1
jax: 0.10.0
libtpu: 0.0.40
codegen_flags: <defaults>
</compile_context>

<pallas_src>
import jax
import jax.numpy as jnp
from jax import lax
from jax.experimental import pallas as pl
from jax.experimental.pallas import tpu as pltpu


def _round_up(x, m):
    return ((x + m - 1) // m) * m


def _choose_block_rows(M, out_dim, vmem_budget_bytes):
    # Per-row VMEM bytes: output double-buffer (2 * out_dim * 4), x block
    # double-buffer lane-padded to 128 lanes (2 * 128 * 4), ~out_dim*4 of
    # headroom for the fused sin temporaries.
    per_row = 2 * out_dim * 4 + 2 * 128 * 4 + out_dim * 4
    tm = max(8, (vmem_budget_bytes // per_row) // 8 * 8)
    tm = min(tm, 1024)                    # 1024-row lane-dense tiles ~ HBM roofline
    tm = min(tm, _round_up(M, 8))         # never bigger than the problem
    if M > 16:
        # at least two grid steps -> v7x megacore sharding + pipeline overlap
        tm = min(tm, max(8, _round_up(pl.cdiv(M, 2), 8)))
    return tm


def _posenc_kernel(x_ref, ssel_ref, o_ref):
    # x_ref:    (TM, K_pad)      f32  row tile of coords, ones column, zero pad
    # ssel_ref: (K_pad, OUT)     f32  masked sigma strips + phase row + zero rows
    # o_ref:    (TM, OUT)        f32
    o_ref[...] = jnp.sin(
        jnp.dot(x_ref[...], ssel_ref[...],
                preferred_element_type=jnp.float32,
                precision=lax.Precision.HIGHEST))


def fixed_positional_encoding(x, num_freq, end=10.0, vmem_budget_bytes=16 << 20):
    """x: (B, N, C) float -> (B, N, C*2*num_freq) float32."""
    B, N, C = x.shape
    M = B * N
    F = int(num_freq)
    out_dim = C * 2 * F

    # sigma = pi * end ** (arange(F) / (F-1)); guard F == 1 (PyTorch would NaN).
    if F > 1:
        exb = jnp.arange(F, dtype=jnp.float32) / jnp.float32(F - 1)
    else:
        exb = jnp.zeros((1,), jnp.float32)
    sigma = jnp.float32(jnp.pi) * jnp.power(jnp.float32(end), exb)          # (F,)

    # Per-output-column constants (computed once, outside the kernel).
    strip_scale = jnp.concatenate([sigma, sigma])                           # (2F,)
    strip_phase = jnp.concatenate(
        [jnp.zeros((F,), jnp.float32),
         jnp.full((F,), jnp.float32(jnp.pi / 2), jnp.float32)])             # (2F,)
    scale_row = jnp.tile(strip_scale, C)                                    # (out_dim,)
    phase_row = jnp.tile(strip_phase, C)                                    # (out_dim,)
    col_coord = jnp.arange(out_dim, dtype=jnp.int32) // (2 * F)
    ssel = jnp.where(
        col_coord[None, :] == jnp.arange(C, dtype=jnp.int32)[:, None],
        scale_row[None, :], jnp.float32(0.0)).astype(jnp.float32)           # (C, out_dim)

    # Fold the phase add into the contraction (extra ones column hits phase row)
    # and pad the contraction dim to a multiple of 8 (zero rows are inert).
    K = C + 1
    K_pad = _round_up(K, 8)
    ssel_aug = jnp.concatenate([ssel, phase_row[None, :]], axis=0)          # (K, out_dim)
    if K_pad != K:
        ssel_aug = jnp.pad(ssel_aug, ((0, K_pad - K), (0, 0)))              # (K_pad, out_dim)

    x_flat = x.reshape(M, C).astype(jnp.float32)
    x_aug = jnp.concatenate([x_flat, jnp.ones((M, 1), jnp.float32)], axis=1)
    if K_pad != K:
        x_aug = jnp.pad(x_aug, ((0, 0), (0, K_pad - K)))                    # (M, K_pad)

    TM = _choose_block_rows(M, out_dim, vmem_budget_bytes)
    grid = (pl.cdiv(M, TM),)   # ragged last block: inputs unspecified, stores masked

    out = pl.pallas_call(
        _posenc_kernel,
        out_shape=jax.ShapeDtypeStruct((M, out_dim), jnp.float32),
        grid_spec=pltpu.PrefetchScalarGridSpec(
            num_scalar_prefetch=0,
            grid=grid,
            in_specs=[
                pl.BlockSpec((TM, K_pad), lambda i: (i, 0)),
                pl.BlockSpec((K_pad, out_dim), lambda i: (0, 0)),
            ],
            out_specs=pl.BlockSpec((TM, out_dim), lambda i: (i, 0)),
        ),
        compiler_params=pltpu.CompilerParams(
            dimension_semantics=("parallel",),
            vmem_limit_bytes=32 << 20),
    )(x_aug, ssel_aug)

    return out.reshape(B, N, out_dim)


def _reference(x, num_freq, end=10.0):
    F = int(num_freq)
    if F > 1:
        exb = jnp.arange(F, dtype=jnp.float32) / jnp.float32(F - 1)
    else:
        exb = jnp.zeros((1,), jnp.float32)
    sigma = (jnp.float32(jnp.pi) * jnp.power(jnp.float32(end), exb)).reshape(1, F)
    B, N, _ = x.shape
    arg = x[..., None].astype(jnp.float32) * sigma                     # (B, N, C, F)
    out = jnp.concatenate([jnp.sin(arg), jnp.cos(arg)], axis=-1)       # (B, N, C, 2F)
    return out.reshape(B, N, -1)


if __name__ == "__main__":
    key = jax.random.PRNGKey(0)
    B, N, C = 2, 9, 4
    x = jax.random.uniform(key, (B, N, C), jnp.float32, minval=-1.0, maxval=1.0)

    # Case 1: out_dim = 128 (lane-dense); M = 18 -> TM = 16, grid = 2 (ragged last block).
    # Case 2: out_dim = 80 (< 128, block last dim == full array dim, masked tail strip).
    for F in (16, 10):
        out = fixed_positional_encoding(x, num_freq=F, end=10.0)
        out = jax.block_until_ready(out)
        ref = _reference(x, num_freq=F, end=10.0)
        assert out.shape == (B, N, C * 2 * F), out.shape
        err = float(jnp.max(jnp.abs(out - ref)))
        assert jnp.allclose(out, ref, atol=1e-4, rtol=1e-5), (F, err)

    print("KERNEL_OK")
</pallas_src>

<mosaic_0001>
module attributes {stable_mosaic.version = 11 : i64} {
  func.func @_posenc_kernel(%arg0: i32, %arg1: memref<16x8xf32, #tpu.memory_space<vmem>>, %arg2: memref<8x128xf32, #tpu.memory_space<vmem>>, %arg3: memref<16x128xf32, #tpu.memory_space<vmem>>) attributes {dimension_semantics = [#tpu.dimension_semantics<parallel>], iteration_bounds = array<i64: 2>, scalar_prefetch = 0 : i64, scratch_operands = 0 : i64, tpu.core_type = #tpu.core_type<tc>, window_params = [{transform_indices = @transform_0, window_bounds = array<i64: 16, 8>}, {pipeline_mode = #tpu.pipeline_mode<synchronous>, transform_indices = @transform_1, window_bounds = array<i64: 8, 128>}, {transform_indices = @transform_2, window_bounds = array<i64: 16, 128>}]} {
    %c0 = arith.constant 0 : index
    %c0_0 = arith.constant 0 : index
    %0 = vector.load %arg1[%c0, %c0_0] : memref<16x8xf32, #tpu.memory_space<vmem>>, vector<16x8xf32>
    %c0_1 = arith.constant 0 : index
    %c0_2 = arith.constant 0 : index
    %1 = vector.load %arg2[%c0_1, %c0_2] : memref<8x128xf32, #tpu.memory_space<vmem>>, vector<8x128xf32>
    %cst = arith.constant dense<0.000000e+00> : vector<16x128xf32>
    %2 = tpu.matmul %0, %1, %cst {dimension_numbers = #tpu.dot_dimension_numbers<[1], [0], [0], [1], [0, 0, 1, 1], [], []>, precision = #tpu.contract_precision<fp32>} : vector<16x8xf32>, vector<8x128xf32>, vector<16x128xf32> -> vector<16x128xf32>
    %3 = math.sin %2 : vector<16x128xf32>
    %c0_3 = arith.constant 0 : index
    %c0_4 = arith.constant 0 : index
    %4 = vector.load %arg3[%c0_3, %c0_4] : memref<16x128xf32, #tpu.memory_space<vmem>>, vector<16x128xf32>
    tpu.vector_store %arg3[%c0_3, %c0_4], %3 {strides = array<i32>} : memref<16x128xf32, #tpu.memory_space<vmem>>, vector<16x128xf32>,
    return
  }
  func.func @transform_0(%arg0: i32) -> (i32, i32) {
    %c0_i32 = arith.constant 0 : i32
    %c0_i32_0 = arith.constant 0 : i32
    return %arg0, %c0_i32 : i32, i32
  }
  func.func @transform_1(%arg0: i32) -> (i32, i32) {
    %c0_i32 = arith.constant 0 : i32
    %c0_i32_0 = arith.constant 0 : i32
    %c0_i32_1 = arith.constant 0 : i32
    return %c0_i32, %c0_i32_0 : i32, i32
  }
  func.func @transform_2(%arg0: i32) -> (i32, i32) {
    %c0_i32 = arith.constant 0 : i32
    %c0_i32_0 = arith.constant 0 : i32
    return %arg0, %c0_i32 : i32, i32
  }
}

</mosaic_0001>

<bundles_post_ra>
// kernel: tpu_custom_call.1
= control target key start
LH: loop header
LB: loop body
LE: loop exit
PB: predicated region body
PF: predicated region fallthrough
CT: control target
= control target key end

     0   :  { %7 = vsyncpa [#allocation3], 0  ;;  %s1387_s0 = inlined_call_operand.vmem [shape: f32[18,8], index: 0, kind: input, shape index: {}]   ;;  %s1388_s1 = inlined_call_operand.vmem [shape: f32[8,128], index: 1, kind: input, shape index: {}]   ;;  %s1389_s2 = inlined_call_operand.hbm [shape: f32[18,128], index: 2, kind: output, shape index: {}]  }
   0x1   :  { %9 = vsyncpa [#allocation3 + $0x1], 0  ;;  %s1193_s9 = smov 0   ;;  %s1195_s10 = smov 0  }
   0x2   :  { %s1197_s11 = smov 0   ;;  %s1199_s12 = smov 0  }
   0x3 LB: > { %s1214_s13 = sadd.s32 4294967295, %s1167_s12   ;;  %s960_s14 = sadd.s32 4294967294, %s1167_s12   ;;  %s1167_s12 = sphi %s1199_s12, %s1397_s12   ;;  %s1163_s11 = sphi %s1197_s11, %s1396_s11   ;;  %s1159_s10 = sphi %s1195_s10, %s1395_s10   ;;  %s1155_s9 = sphi %s1193_s9, %s1394_s9  }
   0x4   : > { %s1218_s15 = sadd.s32 1, %s1167_s12   ;;  %s69_s16 = sadd.s32 1, %s1163_s11 }
   0x5   : > { %s66_s17 = ssub.s32 %s1167_s12, %s1218_s15  ;;  %p79_p0 = scmp.ne.s32.totalorder %s1163_s11, %s1159_s10 }
   0x6   : > { %p67_p1 = scmp.eq.s32.totalorder %s66_s17, 0  ;;  %p80_p2 = scmp.eq.s32.totalorder %s1214_s13, 1 }
   0x7   : > { %p85_p3 = scmp.ne.s32.totalorder %s1159_s10, %s1155_s9  ;;  %p86_p4 = scmp.eq.s32.totalorder %s960_s14, 1 }
   0x8   : > { %s1229_s18 = scalar_select %p67_p1, %s1163_s11, %s69_s16  }
   0x9   : > { %p1231_p5 = por %p80_p2, %p79_p0  ;;  %p1235_p6 = por %p86_p4, %p85_p3 }
   0xa   : > { %p963_p7 = scmp.ge.s32.totalorder %s1167_s12, 1  ;;  %p124_p8 = scmp.lt.s32.totalorder %s1167_s12, 3 }
   0xc   : > { %p125_p9 = pnand %p963_p7, %p124_p8 }
   0xd   : > { %v171_v0 = vld [vmem:[%s1388_s1] sm:$0xff] (!%p125_p9)  ;;  %s1245_s23 = sshll.u32 (!%p125_p9), %s1214_s13, 1  ;;  %vm172_vm0 = vcmask (!%p125_p9), 64512   ;;  %s147_s29 = sand.u32 (!%p125_p9), 1, %s1159_s10   ;;  %v1169_v46 = vmov (!%p125_p9), 683565275  }
   0xe   : > { %128 = sbr.rel (%p125_p9) target bundleno = 386 (0x182), region = 28  ;;  %v180_v1 = vand.u32 (!%p125_p9), 4294901760, %v171_v0  ;;  %p155_p10 = scmp.lt.s32.totalorder (!%p125_p9), %s1245_s23, 2  ;;  %v1170_v50 = vmov (!%p125_p9), 2475754826  }
   0xf   : > { %v1171_v52 = vmov (!%p125_p9), 2131351028   ;;  %v1172_v54 = vmov (!%p125_p9), 2102212464   ;;  %v1173_v56 = vmov (!%p125_p9), 920167782  }
  0x10   : > { %1018 = vmatprep.subr.mxu0 (!%p125_p9), %v180_v1  ;;  %1003 = vmatprep.subr.mxu1 (!%p125_p9), %v180_v1  ;;  %v267_v2 = vsub.f32 (!%p125_p9), %v171_v0, %v180_v1  ;;  %v1174_v63 = vmov (!%p125_p9), 1326507024   ;;  %s964_s30 = sshll.u32 (!%p125_p9), %s147_s29, 4  ;;  %s1327_s4 = scalar_lea.sflag (!%p125_p9), [#allocation3], %s147_s29 }
  0x11   : > { %1019 = vmatpush3.msra.mxu0 (!%p125_p9), %v180_v1  ;;  %1004 = vmatpush3.msra.mxu1 (!%p125_p9), %v180_v1  ;;  %s149_s3 = scalar_lea.vmem (!%p125_p9), [#allocation2], %s964_s30 }
  0x12   : > { %v268_v3 = vand.u32 (!%p125_p9), 4294901760, %v267_v2 }
  0x14   : > { %v269_v6 = vsub.f32 (!%p125_p9), %v267_v2, %v268_v3  ;;  %1023 = vmatprep.subr.mxu0 (!%p125_p9), %v268_v3 }
  0x15   : > { %s156_s24 = scalar_select %p155_p10, %s1245_s23, 2 }
  0x16   : > { %v270_v11 = vand.u32 4294901760, %v269_v6  ;;  %s887_s5 = ssub.s32 (%p1231_p5), 3, %s1245_s23 }
  0x17   : > { %s966_s25 = sshll.u32 %s156_s24, 3  ;;  %p888_p11 = scmp.lt.s32.totalorder (%p1231_p5), %s887_s5, 2 }
  0x18   : > { %s158_s28 = scalar_lea.vmem %s1387_s0, %s966_s25  ;;  %1008 = vmatprep.subr.mxu1 %v270_v11 }
  0x19   : > { %v169_v4 = vld [vmem:[%s158_s28] sm:$0xff]  ;;  %v170_v5 = vld [vmem:[%s158_s28 + $0x8] sm:$0xff] }
  0x1a   : > { %v174_v7 = vsel %vm172_vm0, %v169_v4, 0  ;;  %v177_v8 = vsel %vm172_vm0, %v170_v5, 0 }
  0x1b   : > { %v245_v9 = vand.u32 4294901760, %v174_v7  ;;  %v255_v10 = vand.u32 4294901760, %v177_v8 }
  0x1d   : > { %v246_v12 = vsub.f32 %v174_v7, %v245_v9  ;;  %v256_v13 = vsub.f32 %v177_v8, %v255_v10 }
  0x1f   : > { %v247_v14 = vand.u32 4294901760, %v246_v12  ;;  %v257_v15 = vand.u32 4294901760, %v256_v13 }
  0x21   : > { %1020 = vmatprep.mubr.f32.mxu0 %v247_v14  ;;  %v248_v16 = vsub.f32 %v246_v12, %v247_v14  ;;  %v258_v17 = vsub.f32 %v256_v13, %v257_v15 }
  0x22   : > { %1021 = vmatmul.mubr.f32.vlgmr.msra.gmra.mrb[0].mxu0 %v257_v15 }
  0x23   : > { %v249_v18 = vand.u32 4294901760, %v248_v16  ;;  %v259_v19 = vand.u32 4294901760, %v258_v17  ;;  %1024 = vmatpush3.msra.mxu0 %v268_v3  ;;  %1025 = vmatprep.mubr.f32.mxu0 %v245_v9 }
  0x24   : > { %1028 = vmatprep.subr.mxu0 %v180_v1 }
  0x25   : > { %1005 = vmatprep.mubr.f32.mxu1 %v249_v18 }
  0x26   : > { %1006 = vmatmul.mubr.f32.vlgmr.msra.gmra.mrb[0].mxu1 %v259_v19 }
  0x27   : > { %1009 = vmatpush3.msra.mxu1 %v270_v11  ;;  %1010 = vmatprep.mubr.f32.mxu1 %v245_v9 }
  0x28   : > { %1013 = vmatprep.subr.mxu1 %v267_v2 }
  0x2a   : > { %1026 = vmatmul.mubr.f32.vlgmr.msra.gmra.mrb[0].mxu0 %v255_v10 }
  0x2b   : > { %1029 = vmatpush3.msra.mxu0 %v180_v1  ;;  %1030 = vmatprep.mubr.f32.mxu0 %v245_v9 }
  0x2e   : > { %1011 = vmatmul.mubr.f32.vlgmr.msra.gmra.mrb[0].mxu1 %v255_v10 }
  0x2f   : > { %1014 = vmatpush3.msra.mxu1 %v267_v2  ;;  %1015 = vmatprep.mubr.f32.mxu1 %v246_v12 }
  0x32   : > { %1031 = vmatmul.mubr.f32.vlgmr.msra.gmra.mrb[0].mxu0 %v255_v10 }
  0x36   : > { %1016 = vmatmul.mubr.f32.vlgmr.msra.gmra.mrb[0].mxu1 %v256_v13 }
 0x105   : > { %v1032_v20 = vpop.f32.mrb[0].mxu0 }
 0x106   : > { %v658_v21 = vpop.f32.mrb[1].mxu0 }
 0x109   : > { %v1017_v22 = vpop.f32.mrb[0].mxu1 }
 0x10a   : > { %v1253_v23 = vadd.f32 %v1032_v20, %v1017_v22  ;;  %v417_v24 = vpop.f32.mrb[1].mxu1 }
 0x10b   : > { %v1255_v25 = vadd.f32 %v658_v21, %v417_v24 }
 0x10c   : > { %v772_v26 = vand.u32 2147483647, %v1253_v23  ;;  %v775_v27 = vand.u32 2139095040, %v1253_v23  ;;  %vm774_vm15 = vcmp.lt.s32.totalorder %v1253_v23, 0 }
 0x10d   : > { %v671_v28 = vand.u32 2139095040, %v1255_v25  ;;  %v668_v31 = vand.u32 2147483647, %v1255_v25 }
 0x10e   : > { %v776_v29 = vshrl.u32 %v775_v27, 23  ;;  %v779_v30 = vand.u32 8388607, %v772_v26  ;;  %vm773_vm0 = vcmp.le.f32.partialorder %v772_v26, 0.7853982 }
 0x10f   : > { %v672_v32 = vshrl.u32 %v671_v28, 23  ;;  %v1265_v37 = vand.u32 8388607, %v668_v31 }
 0x110   : > { %v971_v33 = vadd.s32 4294967169, %v776_v29  ;;  %v780_v36 = vor.u32 8388608, %v779_v30 }
 0x111   : > { %v967_v34 = vadd.s32 4294967169, %v672_v32  ;;  %v676_v44 = vor.u32 8388608, %v1265_v37 }
 0x112   : > { %v782_v35 = vadd.s32 1, %v971_v33  ;;  %v1267_v43 = vshll.u32 %v780_v36, 8 }
 0x113   : > { %v678_v38 = vadd.s32 1, %v967_v34 }
 0x114   : > { %vm783_vm1 = vcmp.gt.s32.totalorder %v782_v35, 0 }
 0x115   : > { %v784_v39 = vsel %vm783_vm1, %v782_v35, 0  ;;  %vm679_vm2 = vcmp.gt.s32.totalorder %v678_v38, 0  ;;  %vm670_vm1 = vcmp.lt.s32.totalorder %v1255_v25, 0 }
 0x116   : > { %v785_v40 = vshrl.u32 %v784_v39, 5  ;;  %v786_v41 = vand.u32 31, %v784_v39  ;;  %v680_v42 = vsel %vm679_vm2, %v678_v38, 0  ;;  %v716_v38 = vshll.u32 %v676_v44, 8 }
 0x117   : > { %v1270_v48 = vshrl.u32 %v680_v42, 5  ;;  %v682_v49 = vand.u32 31, %v680_v42  ;;  %vm1312_vm2 = vcmp.le.f32.partialorder %v668_v31, 0.7853982 }
 0x118   : > { %v787_v45 = vsub.s32 32, %v786_v41  ;;  %v789_v47 = vshll.u32 %v1169_v46, %v786_v41  ;;  %v792_v51 = vshll.u32 %v1170_v50, %v786_v41  ;;  %v795_v53 = vshll.u32 %v1171_v52, %v786_v41 }
 0x119   : > { %v798_v55 = vshll.u32 %v1172_v54, %v786_v41  ;;  %v801_v57 = vshll.u32 %v1173_v56, %v786_v41  ;;  %vm804_vm3 = vcmp.lt.s32.totalorder %v785_v40, 1  ;;  %vm805_vm4 = vcmp.lt.s32.totalorder %v785_v40, 2 }
 0x11a   : > { %v790_v58 = vshrl.u32 %v1170_v50, %v787_v45  ;;  %v793_v59 = vshrl.u32 %v1171_v52, %v787_v45  ;;  %v796_v60 = vshrl.u32 %v1172_v54, %v787_v45  ;;  %v788_v61 = vshrl.u32 %v1169_v46, %v787_v45 }
 0x11b   : > { %v799_v62 = vshrl.u32 %v1173_v56, %v787_v45  ;;  %v802_v0 = vshrl.u32 %v1174_v63, %v787_v45  ;;  %v683_v4 = vsub.s32 32, %v682_v49  ;;  %vm806_vm5 = vcmp.lt.s32.totalorder %v785_v40, 3 }
 0x11c   : > { %v791_v1 = vor.u32 %v790_v58, %v789_v47  ;;  %v794_v2 = vor.u32 %v793_v59, %v792_v51  ;;  %v797_v3 = vor.u32 %v796_v60, %v795_v53  ;;  %vm807_vm6 = vcmp.lt.s32.totalorder %v785_v40, 4 }
 0x11d   : > { %v800_v5 = vor.u32 %v799_v62, %v798_v55  ;;  %v803_v6 = vor.u32 %v802_v0, %v801_v57  ;;  %v685_v14 = vshll.u32 %v1169_v46, %v682_v49  ;;  %v686_v17 = vshrl.u32 %v1170_v50, %v683_v4 }
 0x11e   : > { %v808_v7 = vsel %vm804_vm3, %v788_v61, %v791_v1  ;;  %v809_v8 = vsel %vm807_vm6, %v797_v3, 2102212464  ;;  %v812_v9 = vsel %vm804_vm3, %v791_v1, %v794_v2  ;;  %v816_v10 = vsel %vm804_vm3, %v794_v2, %v797_v3 }
 0x11f   : > { %v810_v11 = vsel %vm806_vm5, %v794_v2, %v809_v8  ;;  %v813_v12 = vsel %vm807_vm6, %v800_v5, 920167782  ;;  %v817_v13 = vsel %vm807_vm6, %v803_v6, 1326507024  ;;  %v688_v18 = vshll.u32 %v1170_v50, %v682_v49 }
 0x120   : > { %v814_v15 = vsel %vm806_vm5, %v797_v3, %v813_v12  ;;  %v818_v16 = vsel %vm806_vm5, %v800_v5, %v817_v13  ;;  %v811_v19 = vsel %vm805_vm4, %v808_v7, %v810_v11  ;;  %v689_v22 = vshrl.u32 %v1171_v52, %v683_v4 }
 0x121   : > { %v815_v20 = vsel %vm805_vm4, %v812_v9, %v814_v15  ;;  %v819_v21 = vsel %vm805_vm4, %v816_v10, %v818_v16  ;;  %v687_v30 = vor.u32 %v686_v17, %v685_v14  ;;  %v691_v33 = vshll.u32 %v1171_v52, %v682_v49 }
 0x122   : > { %v1279_v24 = vmul.u32.u64.low %v1267_v43, %v819_v21  ;;  %v1280_v27 = vmul.u32.u64.high %v1267_v43, %v819_v21, %v1279_v24  ;;  %v1283_v28 = vmul.u32.u64.low %v1267_v43, %v815_v20  ;;  %v1284_v29 = vmul.u32.u64.high %v1267_v43, %v815_v20, %v1283_v28 }
 0x123   : > { %v690_v32 = vor.u32 %v689_v22, %v688_v18  ;;  %v692_v34 = vshrl.u32 %v1172_v54, %v683_v4  ;;  %v694_v35 = vshll.u32 %v1172_v54, %v682_v49  ;;  %v695_v36 = vshrl.u32 %v1173_v56, %v683_v4 }
 0x124   : > { %v698_v37 = vshrl.u32 %v1174_v63, %v683_v4  ;;  %v827_v39 = vmul.u32 %v1267_v43, %v811_v19  ;;  %v684_v40 = vshrl.u32 %v1169_v46, %v683_v4  ;;  %v697_v42 = vshll.u32 %v1173_v56, %v682_v49 }
 0x125   : > { %v693_v41 = vor.u32 %v692_v34, %v691_v33  ;;  %vm829_vm7 = vc.u32 %v1280_v27, %v1283_v28  ;;  %v830_v45 = vadd.s32 1, %v1284_v29  ;;  %v696_v47 = vor.u32 %v695_v36, %v694_v35 }
 0x126   : > { %vm700_vm8 = vcmp.lt.s32.totalorder %v1270_v48, 1  ;;  %v699_v50 = vor.u32 %v698_v37, %v697_v42  ;;  %vm702_vm9 = vcmp.lt.s32.totalorder %v1270_v48, 3  ;;  %vm703_vm10 = vcmp.lt.s32.totalorder %v1270_v48, 4 }
 0x127   : > { %v708_v51 = vsel %vm700_vm8, %v687_v30, %v690_v32  ;;  %v831_v44 = vsel %vm829_vm7, %v830_v45, %v1284_v29  ;;  %v705_v52 = vsel %vm703_vm10, %v693_v41, 2102212464  ;;  %v709_v43 = vsel %vm703_vm10, %v696_v47, 920167782 }
 0x128   : > { %v712_v46 = vsel %vm700_vm8, %v690_v32, %v693_v41  ;;  %v832_v53 = vadd.s32 %v831_v44, %v827_v39  ;;  %vm701_vm11 = vcmp.lt.s32.totalorder %v1270_v48, 2  ;;  %v710_v49 = vsel %vm702_vm9, %v693_v41, %v709_v43 }
 0x129   : > { %v713_v54 = vsel %vm703_vm10, %v699_v50, 1326507024  ;;  %v704_v55 = vsel %vm700_vm8, %v684_v40, %v687_v30  ;;  %v706_v56 = vsel %vm702_vm9, %v690_v32, %v705_v52  ;;  %v711_v57 = vsel %vm701_vm11, %v708_v51, %v710_v49 }
 0x12a   : > { %v714_v58 = vsel %vm702_vm9, %v696_v47, %v713_v54  ;;  %v833_v59 = vadd.s32 536870912, %v832_v53  ;;  %v1294_v61 = vmul.u32.u64.low %v716_v38, %v711_v57  ;;  %v1295_v62 = vmul.u32.u64.high %v716_v38, %v711_v57, %v1294_v61 }
 0x12b   : > { %v715_v60 = vsel %vm701_vm11, %v712_v46, %v714_v58  ;;  %v707_v2 = vsel %vm701_vm11, %v704_v55, %v706_v56  ;;  %v828_v18 = vadd.s32 %v1283_v28, %v1280_v27  ;;  %vm864_vm6 = vweird.f32 %v1253_v23 }
 0x12c   : > { %v1297_v63 = vmul.u32.u64.low %v716_v38, %v715_v60  ;;  %v1298_v0 = vmul.u32.u64.high %v716_v38, %v715_v60, %v1297_v63  ;;  %v834_v1 = vshrl.u32 %v833_v59, 30  ;;  %v726_v4 = vadd.s32 1, %v1295_v62 }
 0x12d   : > { %v723_v48 = vmul.u32 %v716_v38, %v707_v2  ;;  %vm760_vm10 = vweird.f32 %v1255_v25 }
 0x12e   : > { %v835_v3 = vshll.u32 %v834_v1, 30  ;;  %vm725_vm12 = vc.u32 %v1298_v0, %v1294_v61  ;;  %v724_v39 = vadd.s32 %v1294_v61, %v1298_v0  ;;  %v858_v28 = vsub.s32 4, %v834_v1 }
 0x12f   : > { %v727_v6 = vsel %vm725_vm12, %v726_v4, %v1295_v62 }
 0x130   : > { %v836_v5 = vsub.s32 %v832_v53, %v835_v3  ;;  %v728_v7 = vadd.s32 %v727_v6, %v723_v48  ;;  %v859_v43 = vsel %vm774_vm15, %v858_v28, %v834_v1 }
 0x131   : > { %v861_v49 = vsel %vm773_vm0, 0, %v859_v43 }
 0x132   : > { %v838_v8 = vsub.s32 0, %v836_v5  ;;  %v729_v9 = vadd.s32 536870912, %v728_v7  ;;  %v865_v58 = vadd.s32 3, %v861_v49 }
 0x134   : > { %v972_v10 = vmin.u32 %v838_v8, %v836_v5  ;;  %v730_v11 = vshrl.u32 %v729_v9, 30  ;;  %v866_v62 = vand.u32 3, %v865_v58 }
 0x136   : > { %v840_v12 = vclz %v972_v10  ;;  %v731_v13 = vshll.u32 %v730_v11, 30  ;;  %v754_v57 = vsub.s32 4, %v730_v11  ;;  %vm871_vm3 = vcmp.eq.s32.totalorder %v866_v62, 2 }
 0x137   : > { %vm868_vm4 = vcmp.eq.s32.totalorder %v866_v62, 0  ;;  %vm867_vm5 = vcmp.lt.s32.totalorder %v866_v62, 2 }
 0x138   : > { %v973_v14 = vadd.s32 4294967294, %v840_v12  ;;  %v732_v15 = vsub.s32 %v728_v7, %v731_v13  ;;  %v755_v61 = vsel %vm670_vm1, %v754_v57, %v730_v11 }
 0x139   : > { %v757_v1 = vsel %vm1312_vm2, 0, %v755_v61 }
 0x13a   : > { %vm974_vm13 = vcmp.lt.s32.totalorder %v973_v14, 0  ;;  %v734_v17 = vsub.s32 0, %v732_v15  ;;  %v761_v48 = vadd.s32 3, %v757_v1 }
 0x13b   : > { %v843_v16 = vsel %vm974_vm13, 0, %v973_v14 }
 0x13c   : > { %v844_v19 = vsub.s32 32, %v843_v16  ;;  %v848_v20 = vsub.s32 4294967266, %v843_v16  ;;  %v968_v21 = vmin.u32 %v734_v17, %v732_v15  ;;  %v845_v22 = vshll.u32 %v836_v5, %v843_v16 }
 0x13d   : > { %v762_v8 = vand.u32 3, %v761_v48 }
 0x13e   : > { %v846_v24 = vshrl.u32 %v828_v18, %v844_v19  ;;  %v849_v29 = vadd.s32 127, %v848_v20  ;;  %v736_v30 = vclz %v968_v21 }
 0x13f   : > { %vm767_vm7 = vcmp.eq.s32.totalorder %v762_v8, 2  ;;  %vm764_vm8 = vcmp.eq.s32.totalorder %v762_v8, 0  ;;  %vm763_vm9 = vcmp.lt.s32.totalorder %v762_v8, 2 }
 0x140   : > { %v847_v32 = vor.u32 %v846_v24, %v845_v22  ;;  %v850_v33 = vshll.u32 %v849_v29, 23  ;;  %v969_v34 = vadd.s32 4294967294, %v736_v30 }
 0x142   : > { %v851_v35 = vor.u32 4788187, %v850_v33  ;;  %vm970_vm14 = vcmp.lt.s32.totalorder %v969_v34, 0  ;;  %v854_v37 = vcvt.s32.f32 %v847_v32 }
 0x143   : > { %v739_v38 = vsel %vm970_vm14, 0, %v969_v34 }
 0x144   : > { %v852_v36 = vand.u32 2147483647, %v851_v35  ;;  %v740_v40 = vsub.s32 32, %v739_v38  ;;  %v744_v41 = vsub.s32 4294967266, %v739_v38  ;;  %v741_v42 = vshll.u32 %v732_v15, %v739_v38 }
 0x146   : > { %v855_v27 = vmul.f32 %v854_v37, %v852_v36  ;;  %v742_v45 = vshrl.u32 %v724_v39, %v740_v40  ;;  %v745_v47 = vadd.s32 127, %v744_v41 }
 0x148   : > { %v856_v50 = vxor.u32 2147483648, %v855_v27  ;;  %v743_v51 = vor.u32 %v742_v45, %v741_v42  ;;  %v746_v44 = vshll.u32 %v745_v47, 23 }
 0x14a   : > { %v857_v52 = vsel %vm774_vm15, %v856_v50, %v855_v27  ;;  %v747_v53 = vor.u32 4788187, %v746_v44  ;;  %v750_v55 = vcvt.s32.f32 %v743_v51 }
 0x14b   : > { %v860_v46 = vsel %vm773_vm0, %v1253_v23, %v857_v52 }
 0x14c   : > { %1097 = vcosq.f32 %v860_v46  ;;  %v748_v54 = vand.u32 2147483647, %v747_v53 }
 0x14d   : > { %1099 = vsinq.f32 %v860_v46 }
 0x14e   : > { %v751_v56 = vmul.f32 %v750_v55, %v748_v54 }
 0x150   : > { %v752_v59 = vxor.u32 2147483648, %v751_v56 }
 0x152   : > { %v753_v60 = vsel %vm670_vm1, %v752_v59, %v751_v56 }
 0x153   : > { %v756_v63 = vsel %vm1312_vm2, %v1255_v25, %v753_v60 }
 0x154   : > { %1101 = vcosq.f32 %v756_v63 }
 0x155   : > { %1103 = vsinq.f32 %v756_v63 }
 0x156   : > { %v1098_v0 = vpop.eup %1097 }
 0x157   : > { %v1100_v2 = vpop.eup %1099  ;;  %v872_v31 = vxor.u32 2147483648, %v1098_v0 }
 0x158   : > { %v869_v3 = vxor.u32 2147483648, %v1100_v2 }
 0x159   : > { %v873_v4 = vsel %vm871_vm3, %v872_v31, %v1100_v2 }
 0x15a   : > { %v870_v5 = vsel %vm868_vm4, %v1098_v0, %v869_v3 }
 0x15b   : > { %v874_v6 = vsel %vm867_vm5, %v870_v5, %v873_v4 }
 0x15c   : > { %v875_v7 = vsel %vm864_vm6, nan, %v874_v6 }
 0x15d   : > { %877 = vst [vmem:[%s149_s3 + $0x8] sm:$0xff] %v875_v7 }
 0x15e   : > { %v1102_v9 = vpop.eup %1101 }
 0x15f   : > { %v1104_v10 = vpop.eup %1103  ;;  %v768_v11 = vxor.u32 2147483648, %v1102_v9  ;;  %885 = sbr.rel (!%p1231_p5) target bundleno = 386 (0x182), region = 32 }
 0x160   : > { %v765_v12 = vxor.u32 2147483648, %v1104_v10 }
 0x161   : > { %v769_v13 = vsel %vm767_vm7, %v768_v11, %v1104_v10 }
 0x162   : > { %v766_v14 = vsel %vm764_vm8, %v1102_v9, %v765_v12 }
 0x163   : > { %v770_v15 = vsel %vm763_vm9, %v766_v14, %v769_v13 }
 0x164   : > { %v771_v16 = vsel %vm760_vm10, nan, %v770_v15 }
 0x165   : > { %876 = vst [vmem:[%s149_s3] sm:$0xff] %v771_v16 }
 0x166   : > { %s1399_s5 = smov (!%p888_p11, %s887_s5), 2 }
 0x167   : > { %s1332_s6 = sshll.u32 %s1399_s5, 7 }
 0x168   : > { %s892_s7 = ssub.s32 256, %s1332_s6 }
 0x169   : > { %893 = vsyncadd %s1327_s4, %s892_s7  ;;  %p978_p12 = scmp.ne.s32.totalorder %s1332_s6, 0  ;;  %s984_s8 = sshll.u32 %s1214_s13, 8 }
 0x16a   : > { %s1341_s17 = scalar_lea.hbm %s1389_s2, %s984_s8  ;;  %s898_s19 = sshll.u32 %s149_s3, 4  ;;  %s1343_s19 = int_to_ptr.vmem [resolvable:$true] %s898_s19 }
 0x16b   : > { %s1105_s21 = scalar_lea.vmem %s1343_s19, %s1332_s6  ;;  %s1175_s22 = smov [#allocation2]  }
 0x16c   : > { %p1106_p13 = scmp.ne.s32.totalorder %s1343_s19, %s1105_s21  ;;  %s1109_s23 = sshll.u32 %s1175_s22, 4  ;;  %s1110_s23 = int_to_ptr.vmem [resolvable:$false] %s1109_s23 }
 0x16d   : > { %s1111_s13 = scalar_lea.vmem %s1110_s23, 512  ;;  %p1112_p2 = scmp.lt.s32.totalorder %s1343_s19, %s1110_s23 }
 0x16e   : > { %p1107_p0 = pnand %p1106_p13, %p978_p12  ;;  %p1113_p3 = scmp.lt.s32.totalorder %s1111_s13, %s1105_s21 }
 0x170   : > { %p1108_p1 = pneg %p1107_p0  ;;  %p1114_p4 = por %p1113_p3, %p1112_p2 }
 0x172   : > { %p1115_p5 = pnand %p1114_p4, %p1108_p1 }
 0x174   : > { %1118 = shalt.err (!%p1115_p5)
}
 0x175   : > { %s1119_s24 = scalar_lea.hbm %s1341_s17, %s1332_s6  ;;  %s1123_s27 = scalar_lea.hbm %s1389_s2, 384 }
 0x176   : > { %p1120_p7 = scmp.ne.s32.totalorder %s1341_s17, %s1119_s24  ;;  %p1124_p10 = scmp.lt.u32.totalorder %s1341_s17, %s1389_s2 }
 0x177   : > { %p1125_p11 = scmp.lt.u32.totalorder %s1123_s27, %s1119_s24  ;;  %p1127_p0 = scmp.lt.u32.totalorder %s1119_s24, %s1341_s17 }
 0x178   : > { %p1121_p8 = pnand %p1120_p7, %p978_p12 }
 0x179   : > { %p1126_p13 = por %p1125_p11, %p1124_p10 }
 0x17a   : > { %p1122_p9 = pneg %p1121_p8 }
 0x17b   : > { %p1128_p1 = por %p1127_p0, %p1126_p13 }
 0x17d   : > { %p1129_p2 = pnand %p1128_p1, %p1122_p9 }
 0x17f   : > { %1132 = shalt.err (!%p1129_p2)
}
 0x180   : > { %s1176_s30 = smov 128   ;;  %s1177_s3 = smov 8  }
 0x181   : > { %904 = dma.vmem_to_hbm [thread:$0]  (%p978_p12), %s1343_s19, %s1332_s6, %s1341_s17, %s1327_s4, %s1176_s30, %s1176_s30, %s1177_s3  }
 0x182 PF: > { %p1056_p3 = scmp.ge.s32.totalorder %s1167_s12, 2  ;;  %s913_s5 = sand.u32 1, %s1155_s9  }
 0x183   : > { %s914_s7 = scalar_lea.sflag [#allocation3], %s913_s5 }
 0x184   : > { %p1053_p4 = pnand %p1056_p3, %p1235_p6 }
 0x186   : > { %1150 = dma.done.wait (!%p1053_p4), %s914_s7, 256  }
 0x187   : > { %1152 = vsyncadd (!%p1053_p4), %s914_s7, 4294967040  ;;  %p12_p5 = scmp.ge.s32.totalorder %s1218_s15, 4   ;;  %s1394_s9 = smov %s1159_s10 }
 0x188   : > { %s1395_s10 = smov %s1163_s11  ;;  %s1396_s11 = smov %s1229_s18 }
 0x189   : > { %s1397_s12 = smov %s1218_s15  ;;  %14 = sbr.rel (!%p12_p5) target bundleno = 3 (0x3), region = 63 }
 0x190   :  { %919 = vsyncpa [#allocation3], 1 }
 0x191   :  { %921 = vsyncpa [#allocation3 + $0x1], 1 }

</bundles_post_ra>
